<compile_context>
chip_gen: v5e
topology: v5e:2x2
jax: 0.10.0
libtpu: 0.0.40
codegen_flags: <defaults>
</compile_context>

<pallas_src>
import functools

import jax
import jax.numpy as jnp
from jax.experimental import pallas as pl
from jax.experimental.pallas import tpu as pltpu


# ----------------------------------------------------------------------------
# Pallas kernels
# ----------------------------------------------------------------------------
def _fused_matmul_kernel(*refs, n_terms, apply_relu):
    """refs = (w_0, x_0, ..., w_{n-1}, x_{n-1}, b, o).

    w_t: (Cout, K_t) bf16, x_t: (K_t, tm) bf16, b: (Cout, 1) f32,
    o: (Cout, tm) f32.   o = [relu](sum_t w_t @ x_t + b).
    Output last dim is the M tile (multiple of 128 or full) -> lane-dense.
    """
    b_ref = refs[2 * n_terms]
    o_ref = refs[2 * n_terms + 1]
    acc = jnp.dot(refs[0][...], refs[1][...], preferred_element_type=jnp.float32)
    for t in range(1, n_terms):
        acc = acc + jnp.dot(refs[2 * t][...], refs[2 * t + 1][...],
                            preferred_element_type=jnp.float32)
    y = acc + b_ref[...]                 # f32 epilogue (no bf16 VPU needed)
    if apply_relu:
        y = jnp.maximum(y, 0.0)
    o_ref[...] = y.astype(o_ref.dtype)


def _maxpool_mask_kernel(xw_ref, pooled_ref, mask_ref):
    """Fused 2x2 max-pool + argmax one-hot.

    xw_ref: (4, P) window-partitioned input, P = C*N*h*w (lane-dense).
    pooled_ref: (1, P) max over the 4 window positions.
    mask_ref: (4, P) first-max one-hot in row-major window order -- the
    information carried by PyTorch's return_indices, directly consumable by
    the unpool kernel.
    """
    x0 = xw_ref[0:1, :]
    x1 = xw_ref[1:2, :]
    x2 = xw_ref[2:3, :]
    x3 = xw_ref[3:4, :]
    m = jnp.maximum(jnp.maximum(x0, x1), jnp.maximum(x2, x3))
    pooled_ref[...] = m
    e0 = x0 == m
    e1 = x1 == m
    e2 = x2 == m
    e3 = x3 == m
    mask_ref[0:1, :] = e0.astype(jnp.float32)
    mask_ref[1:2, :] = (e1 & ~e0).astype(jnp.float32)
    mask_ref[2:3, :] = (e2 & ~e0 & ~e1).astype(jnp.float32)
    mask_ref[3:4, :] = (e3 & ~e0 & ~e1 & ~e2).astype(jnp.float32)


def _unpool_kernel(d_ref, mask_ref, o_ref):
    """Fused nearest-upsample * one-hot mask (max_unpool2d, kernel=stride=2).

    d_ref: (1, P) pooled values, mask_ref/o_ref: (4, P).  The broadcast over
    the 4 window positions happens in-register; no upsampled tensor in HBM.
    """
    o_ref[...] = mask_ref[...] * d_ref[...]


# ----------------------------------------------------------------------------
# Wrappers (glue: padding / im2col / window partition / transposes)
# ----------------------------------------------------------------------------
def _m_tile(M):
    # >= 2 lane-dense (multiple-of-128) tiles along M when M is big enough, so
    # the "parallel" grid axis can shard across v7x's 2 TensorCores; otherwise
    # one full-block step (avoids per-step pipeline overhead on tiny M).
    if M >= 256 and M % 256 == 0:
        return M // 2
    return M


def fused_matmul(terms, bias, apply_relu):
    """terms: list of (w, x) with w: (Cout, K_t), x: (K_t, M), all f32.

    Returns (Cout, M) f32 = [relu](sum_t w @ x + bias).  Inputs are cast to
    bf16 for the MXU; accumulation and epilogue stay f32.
    """
    Cout = terms[0][0].shape[0]
    M = terms[0][1].shape[1]
    tm = _m_tile(M)
    grid = (M // tm,)
    in_specs, args = [], []
    for w, x in terms:
        K = w.shape[1]
        in_specs.append(pl.BlockSpec((Cout, K), lambda m: (0, 0)))
        in_specs.append(pl.BlockSpec((K, tm), lambda m: (0, m)))
        args.append(w.astype(jnp.bfloat16))
        args.append(x.astype(jnp.bfloat16))
    in_specs.append(pl.BlockSpec((Cout, 1), lambda m: (0, 0)))
    args.append(bias.reshape(Cout, 1).astype(jnp.float32))
    kernel = functools.partial(_fused_matmul_kernel, n_terms=len(terms),
                               apply_relu=apply_relu)
    return pl.pallas_call(
        kernel,
        out_shape=jax.ShapeDtypeStruct((Cout, M), jnp.float32),
        grid=grid,
        in_specs=in_specs,
        out_specs=pl.BlockSpec((Cout, tm), lambda m: (0, m)),
        compiler_params=pltpu.CompilerParams(dimension_semantics=("parallel",)),
    )(*args)


def conv3x3_cnhw(inputs, w, b, apply_relu=True):
    """3x3 conv, pad=1, stride=1, on channels-first activations.

    inputs: list of (Ci, N, H, W) tensors whose channels are (virtually)
    concatenated in order -- the skip connection is realized as a second
    accumulated matmul instead of a jnp.concatenate.
    w: (3, 3, sum(Ci), Cout); b: (Cout,).  Returns (Cout, N, H, W).
    """
    Cout = w.shape[-1]
    _, N, H, W = inputs[0].shape
    M = N * H * W
    terms = []
    off = 0
    for x in inputs:
        Ci = x.shape[0]
        wi = w[:, :, off:off + Ci, :]                 # (3,3,Ci,Cout)
        off += Ci
        wT = wi.reshape(9 * Ci, Cout).T               # (Cout, 9Ci), K=(dy,dx,c)
        xp = jnp.pad(x, ((0, 0), (0, 0), (1, 1), (1, 1)))
        cols = [xp[:, :, dy:dy + H, dx:dx + W]
                for dy in range(3) for dx in range(3)]
        patches = jnp.concatenate(cols, axis=0).reshape(9 * Ci, M)  # im2col
        terms.append((wT, patches))
    y = fused_matmul(terms, b, apply_relu)
    return y.reshape(Cout, N, H, W)


def conv1x1_cnhw(x, w, b):
    """1x1 conv.  x: (Cin, N, H, W); w: (1, 1, Cin, Cout); b: (Cout,)."""
    Cin, N, H, W = x.shape
    Cout = w.shape[-1]
    wT = w.reshape(Cin, Cout).T
    y = fused_matmul([(wT, x.reshape(Cin, N * H * W))], b, apply_relu=False)
    return y.reshape(Cout, N, H, W)


def maxpool2x2_with_mask(x):
    """F.max_pool2d(x, 2, 2, return_indices=True) equivalent (CNHW).

    Returns (pooled (C,N,h,w), mask (4, C*N*h*w)) where mask is the first-max
    one-hot per 2x2 window in row-major window order.
    """
    C, N, H, W = x.shape
    h, w = H // 2, W // 2
    P = C * N * h * w
    # window partition (glue): xw[p*2+q, ((c*N+n)*h+i)*w+j] = x[c,n,2i+p,2j+q]
    xw = (x.reshape(C, N, h, 2, w, 2)
           .transpose(3, 5, 0, 1, 2, 4)
           .reshape(4, P))
    pooled, mask = pl.pallas_call(
        _maxpool_mask_kernel,
        out_shape=(jax.ShapeDtypeStruct((1, P), jnp.float32),
                   jax.ShapeDtypeStruct((4, P), jnp.float32)),
    )(xw)
    return pooled.reshape(C, N, h, w), mask


def max_unpool2x2(d, mask):
    """F.max_unpool2d(d, indices, 2, 2) equivalent; indices encoded as mask."""
    C, N, h, w = d.shape
    P = C * N * h * w
    out4 = pl.pallas_call(
        _unpool_kernel,
        out_shape=jax.ShapeDtypeStruct((4, P), jnp.float32),
    )(d.reshape(1, P), mask)
    return (out4.reshape(2, 2, C, N, h, w)
                .transpose(2, 3, 4, 0, 5, 1)
                .reshape(C, N, 2 * h, 2 * w))


# ----------------------------------------------------------------------------
# Parameters (deterministic, in-script)
# ----------------------------------------------------------------------------
def _init_conv(key, kh, kw, cin, cout):
    wkey, bkey = jax.random.split(key)
    fan_in = kh * kw * cin
    w = jax.random.normal(wkey, (kh, kw, cin, cout), jnp.float32) / jnp.sqrt(fan_in)
    b = 0.01 * jax.random.normal(bkey, (cout,), jnp.float32)
    return w, b


def init_params(key, cfg):
    cimg = cfg["image_channels"]
    base = cfg["input_channels"]
    nb = cfg["att_block"]
    c = [base * 2 ** i for i in range(nb)]            # per-block encoder channels
    keys = jax.random.split(key, 2 * nb + 2)
    enc, cin = [], cimg
    for b in range(nb):
        enc.append(_init_conv(keys[b], 3, 3, cin, c[b]))
        cin = c[b]
    dec = []
    for b in range(nb):
        dout = c[b - 1] if b > 0 else c[0]
        dec.append(_init_conv(keys[nb + b], 3, 3, 2 * c[b], dout))
    deco_head = _init_conv(keys[2 * nb], 1, 1, c[0], 1)                   # output_channels=1
    class_head = _init_conv(keys[2 * nb + 1], 1, 1, c[0], cfg["num_structures"])
    return {"enc": enc, "dec": dec, "deco_head": deco_head, "class_head": class_head}


# ----------------------------------------------------------------------------
# VGG_Deco forward
# ----------------------------------------------------------------------------
def vgg_deco_forward(params, x_nchw, cfg):
    N = x_nchw.shape[0]
    x = jnp.transpose(x_nchw, (1, 0, 2, 3))          # NCHW -> CNHW
    skip_list, mask_list = [], []

    # Encoder: att_block x (conv3x3 + ReLU + maxpool2x2 w/ indices)
    for b in range(cfg["att_block"]):
        w, bias = params["enc"][b]
        x = conv3x3_cnhw([x], w, bias, apply_relu=True)
        skip_list.append(x)
        x, mask = maxpool2x2_with_mask(x)
        mask_list.append(mask)

    x_saved = x                                       # (attn_channels, N, s, s)

    # At = torch.zeros([N, t, attn_size, attn_size]); t taken as 1 (see TODO)
    At = jnp.zeros((N, 1, cfg["attn_size"], cfg["attn_size"]), jnp.float32)

    X_deco, out_class, X_tilde_aux = [], [], []
    if cfg["enable_decoder"] == 1:
        d = x
        for b in reversed(range(cfg["att_block"])):
            d = max_unpool2x2(d, mask_list[b])
            w, bias = params["dec"][b]
            # skip connection without materializing the concat: split-K matmul
            d = conv3x3_cnhw([d, skip_list[b]], w, bias, apply_relu=True)
        # fused 1x1 heads: reconstruction (1 ch) + structures (S ch) in one call
        wX, bX = params["deco_head"]
        wS, bS = params["class_head"]
        w_comb = jnp.concatenate([wX, wS], axis=-1)
        b_comb = jnp.concatenate([bX, bS], axis=0)
        heads = conv1x1_cnhw(d, w_comb, b_comb)       # (1+S, N, H, W)
        X_deco.append(jnp.transpose(heads[0:1], (1, 0, 2, 3)))     # -> NCHW
        out_class.append(jnp.transpose(heads[1:], (1, 0, 2, 3)))   # -> NCHW

    out = None  # classifier branch not implemented (broken in reference)

    x_saved_nchw = jnp.transpose(x_saved, (1, 0, 2, 3))
    return [out, At, X_deco, out_class, X_tilde_aux, x_saved_nchw]


# ----------------------------------------------------------------------------
# Main
# ----------------------------------------------------------------------------
if __name__ == "__main__":
    cfg = dict(
        num_classes=10,
        num_structures=2,
        input_channels=4,      # base channel count of the first encoder block
        image_channels=3,      # RGB image input
        image_size=16,
        att_block=3,
        enable_classifier=0,
        enable_decoder=1,
    )
    cfg["attn_channels"] = int(cfg["input_channels"] * 2 ** (cfg["att_block"] - 1))
    cfg["attn_size"] = int(cfg["image_size"] // 2 ** cfg["att_block"])

    key = jax.random.PRNGKey(0)
    pkey, xkey = jax.random.split(key)
    params = init_params(pkey, cfg)
    x = jax.random.normal(
        xkey, (2, cfg["image_channels"], cfg["image_size"], cfg["image_size"]),
        jnp.float32)

    outs = vgg_deco_forward(params, x, cfg)
    jax.block_until_ready(jax.tree_util.tree_leaves(outs))

    # light sanity checks on shapes
    assert outs[1].shape == (2, 1, cfg["attn_size"], cfg["attn_size"])
    assert outs[2][0].shape == (2, 1, cfg["image_size"], cfg["image_size"])
    assert outs[3][0].shape == (2, cfg["num_structures"], cfg["image_size"], cfg["image_size"])
    assert outs[5].shape == (2, cfg["attn_channels"], cfg["attn_size"], cfg["attn_size"])

    print("KERNEL_OK")
</pallas_src>

<mosaic_0001>
module attributes {stable_mosaic.version = 11 : i64} {
  func.func @_fused_matmul_kernel(%arg0: i32, %arg1: memref<4x27xbf16, #tpu.memory_space<vmem>>, %arg2: memref<27x256xbf16, #tpu.memory_space<vmem>>, %arg3: memref<4x1xf32, #tpu.memory_space<vmem>>, %arg4: memref<4x256xf32, #tpu.memory_space<vmem>>) attributes {dimension_semantics = [#tpu.dimension_semantics<parallel>], iteration_bounds = array<i64: 2>, scalar_prefetch = 0 : i64, scratch_operands = 0 : i64, tpu.core_type = #tpu.core_type<tc>, window_params = [{pipeline_mode = #tpu.pipeline_mode<synchronous>, transform_indices = @transform_0, window_bounds = array<i64: 4, 27>}, {transform_indices = @transform_1, window_bounds = array<i64: 27, 256>}, {pipeline_mode = #tpu.pipeline_mode<synchronous>, transform_indices = @transform_2, window_bounds = array<i64: 4, 1>}, {transform_indices = @transform_3, window_bounds = array<i64: 4, 256>}]} {
    %c0 = arith.constant 0 : index
    %c0_0 = arith.constant 0 : index
    %0 = vector.load %arg1[%c0, %c0_0] : memref<4x27xbf16, #tpu.memory_space<vmem>>, vector<4x27xbf16>
    %c0_1 = arith.constant 0 : index
    %c0_2 = arith.constant 0 : index
    %1 = vector.load %arg2[%c0_1, %c0_2] : memref<27x256xbf16, #tpu.memory_space<vmem>>, vector<27x256xbf16>
    %cst = arith.constant dense<0.000000e+00> : vector<4x256xf32>
    %2 = tpu.matmul %0, %1, %cst {dimension_numbers = #tpu.dot_dimension_numbers<[1], [0], [0], [1], [0, 0, 1, 1], [], []>} : vector<4x27xbf16>, vector<27x256xbf16>, vector<4x256xf32> -> vector<4x256xf32>
    %c0_3 = arith.constant 0 : index
    %c0_4 = arith.constant 0 : index
    %3 = vector.load %arg3[%c0_3, %c0_4] : memref<4x1xf32, #tpu.memory_space<vmem>>, vector<4x1xf32>
    %4 = vector.broadcast %3 : vector<4x1xf32> to vector<4x256xf32>
    %5 = arith.addf %2, %4 : vector<4x256xf32>
    %cst_5 = arith.constant 0.000000e+00 : f32
    %6 = vector.broadcast %cst_5 : f32 to vector<4x256xf32>
    %7 = arith.maximumf %5, %6 : vector<4x256xf32>
    %c0_6 = arith.constant 0 : index
    %c0_7 = arith.constant 0 : index
    %8 = vector.load %arg4[%c0_6, %c0_7] : memref<4x256xf32, #tpu.memory_space<vmem>>, vector<4x256xf32>
    tpu.vector_store %arg4[%c0_6, %c0_7], %7 {strides = array<i32>} : memref<4x256xf32, #tpu.memory_space<vmem>>, vector<4x256xf32>,
    return
  }
  func.func @transform_0(%arg0: i32) -> (i32, i32) {
    %c0_i32 = arith.constant 0 : i32
    %c0_i32_0 = arith.constant 0 : i32
    %c0_i32_1 = arith.constant 0 : i32
    return %c0_i32, %c0_i32_0 : i32, i32
  }
  func.func @transform_1(%arg0: i32) -> (i32, i32) {
    %c0_i32 = arith.constant 0 : i32
    %c0_i32_0 = arith.constant 0 : i32
    return %c0_i32, %arg0 : i32, i32
  }
  func.func @transform_2(%arg0: i32) -> (i32, i32) {
    %c0_i32 = arith.constant 0 : i32
    %c0_i32_0 = arith.constant 0 : i32
    %c0_i32_1 = arith.constant 0 : i32
    return %c0_i32, %c0_i32_0 : i32, i32
  }
  func.func @transform_3(%arg0: i32) -> (i32, i32) {
    %c0_i32 = arith.constant 0 : i32
    %c0_i32_0 = arith.constant 0 : i32
    return %c0_i32, %arg0 : i32, i32
  }
}

</mosaic_0001>

<bundles_post_ra>
// kernel: tpu_custom_call.1
= control target key start
LH: loop header
LB: loop body
LE: loop exit
PB: predicated region body
PF: predicated region fallthrough
CT: control target
= control target key end

     0   :  { %8 = vsyncpa [#allocation3], 0  ;;  %s704_s0 = inlined_call_operand.vmem [shape: bf16[4,27], index: 0, kind: input, shape index: {}]   ;;  %s705_s1 = inlined_call_operand.hbm [shape: bf16[27,512], index: 1, kind: input, shape index: {}]   ;;  %s706_s2 = inlined_call_operand.vmem [shape: f32[4,1], index: 2, kind: input, shape index: {}]   ;;  %s707_s3 = inlined_call_operand.hbm [shape: f32[4,512], index: 3, kind: output, shape index: {}]  }
   0x1   :  { %10 = vsyncpa [#allocation3 + $0x1], 0 }
   0x2   :  { %11 = vsyncpa [#allocation4], 0 }
   0x3   :  { %13 = vsyncpa [#allocation4 + $0x1], 0  ;;  %s572_s12 = smov 0   ;;  %s574_s13 = smov 0  }
   0x4   :  { %s576_s14 = smov 0   ;;  %s578_s15 = smov 0  }
   0x5 LB: > { %s593_s16 = sadd.s32 4294967295, %s545_s15   ;;  %s359_s17 = sadd.s32 4294967294, %s545_s15   ;;  %s545_s15 = sphi %s578_s15, %s716_s15   ;;  %s541_s14 = sphi %s576_s14, %s715_s14   ;;  %s537_s13 = sphi %s574_s13, %s714_s13   ;;  %s533_s12 = sphi %s572_s12, %s713_s12  }
   0x6   : > { %s597_s18 = sadd.s32 1, %s545_s15   ;;  %s47_s19 = sadd.s32 1, %s541_s14 }
   0x7   : > { %s44_s20 = ssub.s32 %s545_s15, %s597_s18  ;;  %p54_p0 = scmp.ne.s32.totalorder %s541_s14, %s537_s13 }
   0x8   : > { %p45_p1 = scmp.eq.s32.totalorder %s44_s20, 0  ;;  %p55_p2 = scmp.eq.s32.totalorder %s545_s15, 0 }
   0x9   : > { %p60_p3 = scmp.ne.s32.totalorder %s537_s13, %s533_s12  ;;  %p61_p4 = scmp.eq.s32.totalorder %s593_s16, 0 }
   0xa   : > { %s609_s21 = scalar_select %p45_p1, %s541_s14, %s47_s19  }
   0xb   : > { %p611_p5 = por %p55_p2, %p54_p0  ;;  %p615_p6 = por %p61_p4, %p60_p3 }
   0xc   : > { %p105_p7 = scmp.eq.s32.totalorder %s593_s16, 1  ;;  %p111_p8 = scmp.eq.s32.totalorder %s359_s17, 1 }
   0xd   : > { %p361_p9 = scmp.ge.s32.totalorder %s545_s15, 2  ;;  %p409_p10 = scmp.lt.s32.totalorder %s545_s15, 2 }
   0xe   : > { %p622_p11 = por %p105_p7, %p54_p0  ;;  %p626_p12 = por %p111_p8, %p60_p3 }
   0xf   : > { %s137_s26 = sand.u32 1, %s541_s14   ;;  %s391_s27 = sshll.u32 %s545_s15, 3 }
  0x10   : > { %s362_s28 = sshll.u32 %s137_s26, 5  ;;  %s146_s4 = scalar_lea.hbm %s705_s1, %s391_s27 }
  0x11   : > { %s147_s5 = sshll.u32 %s146_s4, 4  ;;  %s141_s6 = scalar_lea.vmem [#allocation2], %s362_s28  ;;  %s148_s5 = int_to_ptr.hbm [resolvable:$true] %s147_s5 }
  0x12   : > { %s149_s7 = sshll.u32 %s141_s6, 4  ;;  %p637_p13 = pnand %p409_p10, %p611_p5  ;;  %s150_s7 = int_to_ptr.vmem [resolvable:$true] %s149_s7 }
  0x13   : > { %p365_p0 = scmp.ge.s32.totalorder %s545_s15, 1  ;;  %s138_s9 = scalar_lea.sflag [#allocation3], %s137_s26 }
  0x14   : > { %s449_s10 = sshra.s32 %s148_s5, 4  ;;  %p453_p2 = pneg %p637_p13  ;;  %s450_s10 = int_to_ptr.hbm [resolvable:$true] %s449_s10 }
  0x15   : > { %s451_s11 = scalar_lea.hbm %s450_s10, 32  ;;  %s456_s20 = scalar_lea.hbm %s705_s1, 64 }
  0x16   : > { %p452_p1 = scmp.ne.s32.totalorder %s450_s10, %s451_s11  ;;  %p457_p5 = scmp.lt.s32.totalorder %s450_s10, %s705_s1 }
  0x17   : > { %p458_p7 = scmp.lt.s32.totalorder %s456_s20, %s451_s11 }
  0x18   : > { %p454_p3 = pnand %p453_p2, %p452_p1 }
  0x19   : > { %p459_p8 = por %p458_p7, %p457_p5 }
  0x1a   : > { %p455_p4 = pneg %p454_p3 }
  0x1c   : > { %p460_p10 = pnand %p459_p8, %p455_p4 }
  0x1e   : > { %463 = shalt.err (!%p460_p10)
}
  0x1f   : > { %s547_s26 = smov 256   ;;  %s548_s28 = smov 128  }
  0x20   : > { %s549_s29 = smov 8   ;;  %p157_p1 = scmp.lt.s32.totalorder %s545_s15, 3 }
  0x21   : > { %404 = dma.hbm_to_vmem [thread:$0]  (!%p637_p13), %s148_s5, 512, %s150_s7, %s138_s9, %s547_s26, %s548_s28, %s549_s29  }
  0x22   : > { %p158_p2 = pnand %p365_p0, %p157_p1 }
  0x23   : > { %s656_s30 = sand.u32 (!%p158_p2), 1, %s537_s13  }
  0x24   : > { %161 = sbr.rel (%p158_p2) target bundleno = 192 (0xc0), region = 32  ;;  %s366_s4 = sshll.u32 (!%p158_p2), %s656_s30, 5 }
  0x25   : > { %s164_s6 = scalar_lea.sflag (!%p158_p2), [#allocation3], %s656_s30  ;;  %s167_s10 = scalar_lea.vmem (!%p158_p2), [#allocation2], %s366_s4 }
  0x29   : > { %524 = dma.done.wait (%p615_p6), %s164_s6, 512  }
  0x2a   : > { %526 = vsyncadd (%p615_p6), %s164_s6, 4294966784  ;;  %vm227_vm0 = vcmask 1044480   ;;  %v550_v0 = vmov 0   ;;  %vm228_vm1 = vcmask 1045504   ;;  %v551_v1 = vmov 65535   ;;  %s367_s9 = sshll.u32 %s656_s30, 3 }
  0x2b   : > { %448 = vset.pattern.permute.xlu0 %v550_v0  ;;  %v229_v2 = vsel %vm227_vm0, 4294967295, %v551_v1  ;;  %v378_v4 = vld [vmem:[%s167_s10 + $0x10] sm:$0xf]  ;;  %v395_v5 = vld [vmem:[%s167_s10 + $0x14] sm:$0x30]  ;;  %vm223_vm2 = vcmask 220160  }
  0x2c   : > { %v230_v3 = vsel %vm228_vm1, %v229_v2, 0  ;;  %v394_v6 = vld [vmem:[%s167_s10 + $0x14] sm:$0xf]  ;;  %v379_v7 = vor.u32 %v395_v5, %v378_v4  ;;  %v380_v8 = vld [vmem:[%s167_s10 + $0x18] sm:$0x30]  ;;  %s396_s11 = sshll.u32 %s593_s16, 3 }
  0x2d   : > { %v383_v9 = vor.u32 %v394_v6, %v380_v8  ;;  %v370_v10 = vld [vmem:[%s167_s10] sm:$0xf]  ;;  %v393_v11 = vld [vmem:[%s167_s10 + $0x4] sm:$0xf0]  ;;  %v392_v13 = vld [vmem:[%s167_s10 + $0x4] sm:$0xf]  ;;  %s284_s20 = scalar_lea.hbm %s707_s3, %s396_s11 }
  0x2e   : > { %v232_v12 = vand.u32 %v379_v7, %v230_v3  ;;  %v372_v14 = vld [vmem:[%s167_s10 + $0x8] sm:$0xf0]  ;;  %v199_v15 = vld [vmem:[%s706_s2] sm:$0xf]  ;;  %v371_v17 = vor.u32 %v393_v11, %v370_v10  ;;  %s190_s22 = scalar_lea.vmem [#allocation5], %s367_s9  ;;  %s288_s26 = sshll.u32 %s284_s20, 4  ;;  %s289_s26 = int_to_ptr.hbm [resolvable:$true] %s288_s26 }
  0x2f   : > { %v235_v16 = vand.u32 %v383_v9, %v230_v3  ;;  %202 = vperm.xlu0 %448, %v199_v15   ;;  %v375_v18 = vor.u32 %v392_v13, %v372_v14  ;;  %v194_v19 = vld [vmem:[%s704_s0] sm:$0x3]  ;;  %s286_s27 = sshll.u32 %s190_s22, 4  ;;  %vm268_vm3 = vcmask 1043456   ;;  %s273_s16 = scalar_lea.sflag [#allocation4], %s656_s30  ;;  %s287_s27 = int_to_ptr.vmem [resolvable:$true] %s286_s27 }
  0x30   : > { %243 = vmatpush.bf16.msra.mxu0 %v232_v12  ;;  %s493_s28 = sshra.s32 %s289_s26, 4  ;;  %s499_s10 = scalar_lea.hbm %s707_s3, 16  ;;  %s494_s28 = int_to_ptr.hbm [resolvable:$true] %s493_s28 }
  0x31   : > { %256 = vmatpush.bf16.msra.mxu1 %v235_v16  ;;  %s495_s29 = scalar_lea.hbm %s494_s28, 8  ;;  %p500_p3 = scmp.lt.s32.totalorder %s494_s28, %s707_s3 }
  0x32   : > { %p496_p6 = scmp.ne.s32.totalorder %s494_s28, %s495_s29  ;;  %p501_p4 = scmp.lt.s32.totalorder %s499_s10, %s495_s29 }
  0x34   : > { %244 = vmatpush.bf16.msra.mxu0 %v371_v17  ;;  %p497_p13 = pnand %p496_p6, %p622_p11  ;;  %p502_p5 = por %p501_p4, %p500_p3 }
  0x35   : > { %257 = vmatpush.bf16.msra.mxu1 %v375_v18 }
  0x36   : > { %p498_p0 = pneg %p497_p13 }
  0x37   : > { %384 = vmatmul.msk.bf16.vlgmr.msra.gmra.mxu0 %vm223_vm2, %v194_v19 }
  0x38   : > { %385 = vmatmul.msk.bf16.vlgmr.msra.gmra.mxu1 %vm223_vm2, %v194_v19  ;;  %p503_p7 = pnand %p502_p5, %p498_p0 }
  0xa1   : > { %v203_v20 = vpop.permute.xlu0 %202 }
  0xb4   : > { %v246_v21 = vpop.f32.mrf.mxu0 }
  0xb5   : > { %v259_v22 = vpop.f32.mrf.mxu1  ;;  %v247_v23 = vadd.f32 %v246_v21, %v203_v20 }
  0xb6   : > { %v260_v24 = vadd.f32 %v259_v22, %v203_v20 }
  0xb7   : > { %v263_v26 = vmax.f32 %v247_v23, 0.0 }
  0xb8   : > { %v264_v25 = vmax.f32 %v260_v24, 0.0 }
  0xba   : > { %v267_v27 = vrot.slane %v264_v25, 4 }
  0xbc   : > { %v269_v28 = vsel %vm268_vm3, %v263_v26, %v267_v27  ;;  %v248_v29 = vpop.f32.mrf.mxu0 }
  0xbd   : > { %v261_v30 = vpop.f32.mrf.mxu1  ;;  %271 = vst [vmem:[%s190_s22] sm:$0xff] %v269_v28 }
  0xbe   : > { %506 = shalt.err (!%p503_p7)
}
  0xbf   : > { %399 = dma.vmem_to_hbm [thread:$0]  (%p622_p11), %s287_s27, 128, %s289_s26, %s273_s16  }
  0xc0 PF: > { %s300_s30 = sand.u32 1, %s533_s12   ;;  %p406_p8 = pnand %p361_p9, %p626_p12 }
  0xc1   : > { %s301_s7 = scalar_lea.sflag [#allocation4], %s300_s30 }
  0xc2   : > { %p407_p10 = pneg %p406_p8 }
  0xc4   : > { %528 = dma.done.wait (%p407_p10), %s301_s7, 128  }
  0xc5   : > { %530 = vsyncadd (%p407_p10), %s301_s7, 4294967168  ;;  %p16_p1 = scmp.ge.s32.totalorder %s597_s18, 4   ;;  %s713_s12 = smov %s537_s13 }
  0xc6   : > { %s714_s13 = smov %s541_s14  ;;  %s715_s14 = smov %s609_s21 }
  0xc7   : > { %s716_s15 = smov %s597_s18  ;;  %18 = sbr.rel (!%p16_p1) target bundleno = 5 (0x5), region = 77 }
  0xcc   :  { %307 = vsyncpa [#allocation3], 1 }
  0xcd   :  { %309 = vsyncpa [#allocation3 + $0x1], 1 }
  0xce   :  { %310 = vsyncpa [#allocation4], 1 }
  0xcf   :  { %312 = vsyncpa [#allocation4 + $0x1], 1 }

</bundles_post_ra>
